<compile_context>
chip_gen: v6e
topology: v6e:2x2x1
jax: 0.10.0
libtpu: 0.0.40
codegen_flags: <defaults>
</compile_context>

<pallas_src>
import functools
import math

import jax
import jax.numpy as jnp
from jax.experimental import pallas as pl
from jax.experimental.pallas import tpu as pltpu


# ----------------------------------------------------------------------------
# Kernel
# ----------------------------------------------------------------------------
def _lstm_cell_kernel(x_ref, hx_ref, wx_ref, wh_ref, b_ref, cx_ref,
                      hy_ref, cy_ref):
    """One (hidden-tile, batch-tile) block of the LSTMCell forward pass.

    Shapes seen by the kernel:
      x_ref  : (tb, in_size)        input activations (compute dtype)
      hx_ref : (tb, H)              previous hidden state (compute dtype)
      wx_ref : (1, in_size, 4*th)   x-part weight slab, gate-major columns
      wh_ref : (1, H, 4*th)         h-part weight slab, gate-major columns
      b_ref  : (1, 1, 4*th)         pre-folded bias (b_x + b_h), float32
      cx_ref : (tb, th)             previous cell-state tile (float32)
      hy_ref : (tb, th)             new hidden-state tile
      cy_ref : (tb, th)             new cell-state tile (aliased onto cx)
    """
    th = cx_ref.shape[-1]

    # Single wide-N matmul per K-slab, accumulated in f32 on the MXU.
    gates = jnp.dot(x_ref[...], wx_ref[0], preferred_element_type=jnp.float32)
    gates = gates + jnp.dot(hx_ref[...], wh_ref[0],
                            preferred_element_type=jnp.float32)
    gates = gates + b_ref[0].astype(jnp.float32)

    # Gate-major-within-tile columns -> lane-aligned slices at multiples of th.
    ingate     = jax.nn.sigmoid(gates[:, 0 * th:1 * th])
    forgetgate = jax.nn.sigmoid(gates[:, 1 * th:2 * th])
    cellgate   = jnp.tanh(gates[:, 2 * th:3 * th])
    outgate    = jax.nn.sigmoid(gates[:, 3 * th:4 * th])

    cx = cx_ref[...].astype(jnp.float32)
    cy = cx * forgetgate + ingate * cellgate
    hy = outgate * jnp.tanh(cy)

    hy_ref[...] = hy.astype(hy_ref.dtype)
    cy_ref[...] = cy.astype(cy_ref.dtype)


# ----------------------------------------------------------------------------
# One-time parameter preparation (do NOT call per step)
# ----------------------------------------------------------------------------
def prepare_lstm_params(w_x, w_h, b_x, b_h, *, block_h,
                        param_dtype=jnp.bfloat16):
    """Relayouts the LSTMCell parameters for the Pallas kernel.

    Args:
      w_x : (input_size, 4H)  pre-transposed nn.Linear x2h weight (gate-major)
      w_h : (H, 4H)           pre-transposed nn.Linear h2h weight (gate-major)
      b_x, b_h : (1, 4H)
      block_h : hidden tile size used by the kernel (must divide H).
      param_dtype : storage dtype for the MXU weight operands (bf16 default).

    Returns:
      wx4 : (H//th, input_size, 4*th)  per-tile gate-major x-weights
      wh4 : (H//th, H, 4*th)           per-tile gate-major h-weights
      b4  : (H//th, 1, 4*th)           folded bias, float32
    """
    four_h = w_x.shape[1]
    H = four_h // 4
    th = block_h
    assert H % th == 0, "block_h must divide hidden_size"
    n_h = H // th

    def relayout(w):
        k_in = w.shape[0]
        w = w.reshape(k_in, 4, n_h, th)        # (K, gate, j, t)
        w = w.transpose(2, 0, 1, 3)            # (j, K, gate, t)
        return w.reshape(n_h, k_in, 4 * th).astype(param_dtype)

    wx4 = relayout(w_x)
    wh4 = relayout(w_h)

    b = (b_x + b_h).reshape(4, n_h, th)        # (gate, j, t)
    b4 = b.transpose(1, 0, 2).reshape(n_h, 1, 4 * th).astype(jnp.float32)
    return wx4, wh4, b4


# ----------------------------------------------------------------------------
# Forward wrapper
# ----------------------------------------------------------------------------
def _pick_tile(dim, preferred, align):
    """Largest multiple of `align` that divides `dim` and is <= preferred."""
    if dim <= preferred:
        return dim
    t = (preferred // align) * align
    while t >= align:
        if dim % t == 0:
            return t
        t -= align
    return dim


def default_block_h(hidden_size):
    # th<=256 fits comfortably (double-buffered) in v7x's 64 MiB VMEM at
    # production K; v5e/v6e could take 512 but 256 is safe everywhere.
    return _pick_tile(hidden_size, 256, 128)


def default_block_b(batch):
    return _pick_tile(batch, 128, 8)


def lstm_cell_forward(x, hx, cx, wx4, wh4, b4, *, block_b=None,
                      compute_dtype=jnp.bfloat16):
    """Runs one LSTMCell step as a tiled Pallas TPU kernel.

    Args:
      x   : (B, input_size)
      hx  : (B, H)
      cx  : (B, H)
      wx4, wh4, b4 : outputs of prepare_lstm_params (block_h is implied by
        their shapes).
      block_b : batch tile (default chosen automatically; multiple of 8 unless
        equal to B).
      compute_dtype : dtype for the MXU activation operands.  Gate math and
        accumulation stay float32.

    Returns:
      (hy, cy), each (B, H) in cx.dtype.
    """
    B, H = hx.shape
    in_size = x.shape[1]
    n_h = wx4.shape[0]
    th = H // n_h
    assert wx4.shape == (n_h, in_size, 4 * th)
    assert wh4.shape == (n_h, H, 4 * th)
    assert b4.shape == (n_h, 1, 4 * th)

    tb = default_block_b(B) if block_b is None else block_b
    if B % tb != 0:
        raise ValueError(f"block_b={tb} must divide batch={B}")
    if tb != B and tb % 8 != 0:
        raise ValueError(f"block_b={tb} must be a multiple of 8")
    if th != H and th % 128 != 0:
        raise ValueError(f"block_h={th} must be a multiple of 128")

    out_dtype = cx.dtype
    n_b = B // tb

    if compute_dtype is not None:
        x = x.astype(compute_dtype)
        hx = hx.astype(compute_dtype)
        # Weights are assumed to be stored in the compute dtype already
        # (prepare_lstm_params); no per-call weight cast.

    w_bytes = jnp.dtype(wx4.dtype).itemsize
    a_bytes = jnp.dtype(x.dtype).itemsize
    o_bytes = jnp.dtype(out_dtype).itemsize
    per_step = ((in_size + H) * 4 * th * w_bytes      # weight slabs
                + 4 * th * 4                          # bias
                + tb * (in_size + H) * a_bytes        # x, hx tiles
                + tb * th * 4                         # cx tile
                + 2 * tb * th * o_bytes)              # hy, cy tiles
    vmem_limit = int(min(64 * 1024 * 1024,
                         max(32 * 1024 * 1024, 2 * per_step + (4 << 20))))

    # Grid: hidden tiles OUTER, batch tiles INNER.  Weight/bias block indices
    # depend only on the outer axis -> VMEM-resident across batch tiles.
    grid = (n_h, n_b)

    hy, cy = pl.pallas_call(
        _lstm_cell_kernel,
        out_shape=(jax.ShapeDtypeStruct((B, H), out_dtype),
                   jax.ShapeDtypeStruct((B, H), out_dtype)),
        grid_spec=pltpu.PrefetchScalarGridSpec(
            num_scalar_prefetch=0,
            grid=grid,
            in_specs=[
                pl.BlockSpec((tb, in_size), lambda j, i: (i, 0)),       # x
                pl.BlockSpec((tb, H), lambda j, i: (i, 0)),             # hx
                pl.BlockSpec((1, in_size, 4 * th), lambda j, i: (j, 0, 0)),
                pl.BlockSpec((1, H, 4 * th), lambda j, i: (j, 0, 0)),
                pl.BlockSpec((1, 1, 4 * th), lambda j, i: (j, 0, 0)),   # bias
                pl.BlockSpec((tb, th), lambda j, i: (i, j)),            # cx
            ],
            out_specs=(pl.BlockSpec((tb, th), lambda j, i: (i, j)),     # hy
                       pl.BlockSpec((tb, th), lambda j, i: (i, j))),    # cy
        ),
        # cx (input 5) is aliased onto cy (output 1): same shape/dtype tiles,
        # identical index_map, so no extra output allocation.
        input_output_aliases={5: 1},
        compiler_params=pltpu.CompilerParams(
            dimension_semantics=("parallel", "parallel"),
            vmem_limit_bytes=vmem_limit,
        ),
    )(x, hx, wx4, wh4, b4, cx)

    return hy, cy


# ----------------------------------------------------------------------------
# Reference + self-test
# ----------------------------------------------------------------------------
def reference_lstm_cell(x, hx, cx, w_x, w_h, b_x, b_h):
    gates = x @ w_x + b_x + hx @ w_h + b_h
    H = hx.shape[1]
    i = jax.nn.sigmoid(gates[:, 0 * H:1 * H])
    f = jax.nn.sigmoid(gates[:, 1 * H:2 * H])
    g = jnp.tanh(gates[:, 2 * H:3 * H])
    o = jax.nn.sigmoid(gates[:, 3 * H:4 * H])
    cy = cx * f + i * g
    hy = o * jnp.tanh(cy)
    return hy, cy


if __name__ == "__main__":

    def make_inputs(key, batch, input_size, hidden_size):
        k_x, k_h, k_c, k_wx, k_wh, k_bx, k_bh = jax.random.split(key, 7)
        # Mirrors reset_parameters(): uniform(-std, std), std = 1/sqrt(H).
        std = 1.0 / math.sqrt(hidden_size)
        # nn.Linear stores weight as (4H, in); pre-transposed to (in, 4H).
        w_x = jax.random.uniform(k_wx, (input_size, 4 * hidden_size),
                                 jnp.float32, -std, std)
        w_h = jax.random.uniform(k_wh, (hidden_size, 4 * hidden_size),
                                 jnp.float32, -std, std)
        b_x = jax.random.uniform(k_bx, (1, 4 * hidden_size),
                                 jnp.float32, -std, std)
        b_h = jax.random.uniform(k_bh, (1, 4 * hidden_size),
                                 jnp.float32, -std, std)
        x = jax.random.normal(k_x, (batch, input_size), jnp.float32)
        hx = jax.random.normal(k_h, (batch, hidden_size), jnp.float32)
        cx = jax.random.normal(k_c, (batch, hidden_size), jnp.float32)
        return x, hx, cx, w_x, w_h, b_x, b_h

    key = jax.random.PRNGKey(0)
    k_small, k_big = jax.random.split(key)

    # 1) Small LSTMCell-consistent shapes, single-tile grid, f32 params
    #    (tight tolerance check of the kernel math).
    x, hx, cx, w_x, w_h, b_x, b_h = make_inputs(
        k_small, batch=8, input_size=16, hidden_size=32)
    th = default_block_h(32)
    params_f32 = prepare_lstm_params(w_x, w_h, b_x, b_h, block_h=th,
                                     param_dtype=jnp.float32)
    fwd_f32 = jax.jit(functools.partial(lstm_cell_forward,
                                        compute_dtype=jnp.float32))
    hy, cy = fwd_f32(x, hx, cx, *params_f32)
    jax.block_until_ready((hy, cy))
    hy_ref, cy_ref = reference_lstm_cell(x, hx, cx, w_x, w_h, b_x, b_h)
    assert jnp.allclose(hy, hy_ref, atol=1e-5, rtol=1e-5)
    assert jnp.allclose(cy, cy_ref, atol=1e-5, rtol=1e-5)

    # 2) Default bf16 MXU-operand path on the same shapes (looser tolerance).
    params_bf16 = prepare_lstm_params(w_x, w_h, b_x, b_h, block_h=th)
    hy_b, cy_b = jax.jit(lstm_cell_forward)(x, hx, cx, *params_bf16)
    jax.block_until_ready((hy_b, cy_b))
    assert jnp.allclose(hy_b, hy_ref, atol=5e-2, rtol=5e-2)
    assert jnp.allclose(cy_b, cy_ref, atol=5e-2, rtol=5e-2)

    # 3) Shapes exercising the (hidden-tile OUTER, batch-tile INNER) grid.
    x2, hx2, cx2, w_x2, w_h2, b_x2, b_h2 = make_inputs(
        k_big, batch=16, input_size=64, hidden_size=256)
    params2 = prepare_lstm_params(w_x2, w_h2, b_x2, b_h2, block_h=128)
    fwd_tiled = jax.jit(functools.partial(lstm_cell_forward, block_b=8))
    hy2, cy2 = fwd_tiled(x2, hx2, cx2, *params2)
    jax.block_until_ready((hy2, cy2))
    hy2_ref, cy2_ref = reference_lstm_cell(x2, hx2, cx2, w_x2, w_h2,
                                           b_x2, b_h2)
    assert jnp.allclose(hy2, hy2_ref, atol=5e-2, rtol=5e-2)
    assert jnp.allclose(cy2, cy2_ref, atol=5e-2, rtol=5e-2)

    print("KERNEL_OK")
</pallas_src>

<mosaic_0001>
module attributes {stable_mosaic.version = 11 : i64} {
  func.func @_lstm_cell_kernel(%arg0: i32, %arg1: i32, %arg2: memref<8x16xf32, #tpu.memory_space<vmem>>, %arg3: memref<8x32xf32, #tpu.memory_space<vmem>>, %arg4: memref<1x16x128xf32, #tpu.memory_space<vmem>>, %arg5: memref<1x32x128xf32, #tpu.memory_space<vmem>>, %arg6: memref<1x1x128xf32, #tpu.memory_space<vmem>>, %arg7: memref<8x32xf32, #tpu.memory_space<vmem>>, %arg8: memref<8x32xf32, #tpu.memory_space<vmem>>, %arg9: memref<8x32xf32, #tpu.memory_space<vmem>>) attributes {dimension_semantics = [#tpu.dimension_semantics<parallel>, #tpu.dimension_semantics<parallel>], iteration_bounds = array<i64: 1, 1>, scalar_prefetch = 0 : i64, scratch_operands = 0 : i64, tpu.core_type = #tpu.core_type<tc>, window_params = [{transform_indices = @transform_0, window_bounds = array<i64: 8, 16>}, {transform_indices = @transform_1, window_bounds = array<i64: 8, 32>}, {transform_indices = @transform_2, window_bounds = array<i64: 1, 16, 128>}, {transform_indices = @transform_3, window_bounds = array<i64: 1, 32, 128>}, {transform_indices = @transform_4, window_bounds = array<i64: 1, 1, 128>}, {transform_indices = @transform_5, window_bounds = array<i64: 8, 32>}, {transform_indices = @transform_6, window_bounds = array<i64: 8, 32>}, {transform_indices = @transform_7, window_bounds = array<i64: 8, 32>}]} {
    %c0 = arith.constant 0 : index
    %c0_0 = arith.constant 0 : index
    %0 = vector.load %arg2[%c0, %c0_0] : memref<8x16xf32, #tpu.memory_space<vmem>>, vector<8x16xf32>
    %c0_1 = arith.constant 0 : index
    %c0_2 = arith.constant 0 : index
    %c0_3 = arith.constant 0 : index
    %1 = vector.load %arg4[%c0_1, %c0_2, %c0_3] : memref<1x16x128xf32, #tpu.memory_space<vmem>>, vector<1x16x128xf32>
    %2 = vector.shape_cast %1 : vector<1x16x128xf32> to vector<16x128xf32>
    %cst = arith.constant dense<0.000000e+00> : vector<8x128xf32>
    %3 = tpu.matmul %0, %2, %cst {dimension_numbers = #tpu.dot_dimension_numbers<[1], [0], [0], [1], [0, 0, 1, 1], [], []>} : vector<8x16xf32>, vector<16x128xf32>, vector<8x128xf32> -> vector<8x128xf32>
    %c0_4 = arith.constant 0 : index
    %c0_5 = arith.constant 0 : index
    %4 = vector.load %arg3[%c0_4, %c0_5] : memref<8x32xf32, #tpu.memory_space<vmem>>, vector<8x32xf32>
    %c0_6 = arith.constant 0 : index
    %c0_7 = arith.constant 0 : index
    %c0_8 = arith.constant 0 : index
    %5 = vector.load %arg5[%c0_6, %c0_7, %c0_8] : memref<1x32x128xf32, #tpu.memory_space<vmem>>, vector<1x32x128xf32>
    %6 = vector.shape_cast %5 : vector<1x32x128xf32> to vector<32x128xf32>
    %cst_9 = arith.constant dense<0.000000e+00> : vector<8x128xf32>
    %7 = tpu.matmul %4, %6, %cst_9 {dimension_numbers = #tpu.dot_dimension_numbers<[1], [0], [0], [1], [0, 0, 1, 1], [], []>} : vector<8x32xf32>, vector<32x128xf32>, vector<8x128xf32> -> vector<8x128xf32>
    %8 = arith.addf %3, %7 : vector<8x128xf32>
    %c0_10 = arith.constant 0 : index
    %c0_11 = arith.constant 0 : index
    %c0_12 = arith.constant 0 : index
    %9 = vector.load %arg6[%c0_10, %c0_11, %c0_12] : memref<1x1x128xf32, #tpu.memory_space<vmem>>, vector<1x1x128xf32>
    %10 = vector.shape_cast %9 : vector<1x1x128xf32> to vector<1x128xf32>
    %11 = vector.broadcast %10 : vector<1x128xf32> to vector<8x128xf32>
    %12 = arith.addf %8, %11 : vector<8x128xf32>
    %13 = vector.extract_strided_slice %12 {offsets = [0, 0], sizes = [8, 32], strides = [1, 1]} : vector<8x128xf32> to vector<8x32xf32>
    %14 = arith.negf %13 : vector<8x32xf32>
    %15 = math.exp %14 : vector<8x32xf32>
    %cst_13 = arith.constant 1.000000e+00 : f32
    %16 = vector.broadcast %cst_13 : f32 to vector<8x32xf32>
    %17 = arith.addf %16, %15 : vector<8x32xf32>
    %18 = arith.divf %16, %17 : vector<8x32xf32>
    %19 = vector.extract_strided_slice %12 {offsets = [0, 32], sizes = [8, 32], strides = [1, 1]} : vector<8x128xf32> to vector<8x32xf32>
    %20 = arith.negf %19 : vector<8x32xf32>
    %21 = math.exp %20 : vector<8x32xf32>
    %cst_14 = arith.constant 1.000000e+00 : f32
    %22 = vector.broadcast %cst_14 : f32 to vector<8x32xf32>
    %23 = arith.addf %22, %21 : vector<8x32xf32>
    %24 = arith.divf %22, %23 : vector<8x32xf32>
    %25 = vector.extract_strided_slice %12 {offsets = [0, 64], sizes = [8, 32], strides = [1, 1]} : vector<8x128xf32> to vector<8x32xf32>
    %26 = math.tanh %25 : vector<8x32xf32>
    %27 = vector.extract_strided_slice %12 {offsets = [0, 96], sizes = [8, 32], strides = [1, 1]} : vector<8x128xf32> to vector<8x32xf32>
    %28 = arith.negf %27 : vector<8x32xf32>
    %29 = math.exp %28 : vector<8x32xf32>
    %cst_15 = arith.constant 1.000000e+00 : f32
    %30 = vector.broadcast %cst_15 : f32 to vector<8x32xf32>
    %31 = arith.addf %30, %29 : vector<8x32xf32>
    %32 = arith.divf %30, %31 : vector<8x32xf32>
    %c0_16 = arith.constant 0 : index
    %c0_17 = arith.constant 0 : index
    %33 = vector.load %arg7[%c0_16, %c0_17] : memref<8x32xf32, #tpu.memory_space<vmem>>, vector<8x32xf32>
    %34 = arith.mulf %33, %24 : vector<8x32xf32>
    %35 = arith.mulf %18, %26 : vector<8x32xf32>
    %36 = arith.addf %34, %35 : vector<8x32xf32>
    %37 = math.tanh %36 : vector<8x32xf32>
    %38 = arith.mulf %32, %37 : vector<8x32xf32>
    %c0_18 = arith.constant 0 : index
    %c0_19 = arith.constant 0 : index
    %39 = vector.load %arg8[%c0_18, %c0_19] : memref<8x32xf32, #tpu.memory_space<vmem>>, vector<8x32xf32>
    tpu.vector_store %arg8[%c0_18, %c0_19], %38 {strides = array<i32>} : memref<8x32xf32, #tpu.memory_space<vmem>>, vector<8x32xf32>,
    %c0_20 = arith.constant 0 : index
    %c0_21 = arith.constant 0 : index
    %40 = vector.load %arg9[%c0_20, %c0_21] : memref<8x32xf32, #tpu.memory_space<vmem>>, vector<8x32xf32>
    tpu.vector_store %arg9[%c0_20, %c0_21], %36 {strides = array<i32>} : memref<8x32xf32, #tpu.memory_space<vmem>>, vector<8x32xf32>,
    return
  }
  func.func @transform_0(%arg0: i32, %arg1: i32) -> (i32, i32) {
    %c0_i32 = arith.constant 0 : i32
    %c0_i32_0 = arith.constant 0 : i32
    return %arg1, %c0_i32 : i32, i32
  }
  func.func @transform_1(%arg0: i32, %arg1: i32) -> (i32, i32) {
    %c0_i32 = arith.constant 0 : i32
    %c0_i32_0 = arith.constant 0 : i32
    return %arg1, %c0_i32 : i32, i32
  }
  func.func @transform_2(%arg0: i32, %arg1: i32) -> (i32, i32, i32) {
    %c0_i32 = arith.constant 0 : i32
    %c0_i32_0 = arith.constant 0 : i32
    %c0_i32_1 = arith.constant 0 : i32
    return %arg0, %c0_i32, %c0_i32_0 : i32, i32, i32
  }
  func.func @transform_3(%arg0: i32, %arg1: i32) -> (i32, i32, i32) {
    %c0_i32 = arith.constant 0 : i32
    %c0_i32_0 = arith.constant 0 : i32
    %c0_i32_1 = arith.constant 0 : i32
    return %arg0, %c0_i32, %c0_i32_0 : i32, i32, i32
  }
  func.func @transform_4(%arg0: i32, %arg1: i32) -> (i32, i32, i32) {
    %c0_i32 = arith.constant 0 : i32
    %c0_i32_0 = arith.constant 0 : i32
    %c0_i32_1 = arith.constant 0 : i32
    return %arg0, %c0_i32, %c0_i32_0 : i32, i32, i32
  }
  func.func @transform_5(%arg0: i32, %arg1: i32) -> (i32, i32) {
    %c0_i32 = arith.constant 0 : i32
    return %arg1, %arg0 : i32, i32
  }
  func.func @transform_6(%arg0: i32, %arg1: i32) -> (i32, i32) {
    %c0_i32 = arith.constant 0 : i32
    return %arg1, %arg0 : i32, i32
  }
  func.func @transform_7(%arg0: i32, %arg1: i32) -> (i32, i32) {
    %c0_i32 = arith.constant 0 : i32
    return %arg1, %arg0 : i32, i32
  }
}

</mosaic_0001>

<bundles_post_ra>
// kernel: lstm_cell_forward.1
= control target key start
LH: loop header
LB: loop body
LE: loop exit
PB: predicated region body
PF: predicated region fallthrough
CT: control target
= control target key end

     0   :  { %13 = vsyncpa [#allocation3], 0  ;;  %s529_s0 = inlined_call_operand.vmem [shape: f32[8,16], index: 0, kind: input, shape index: {}]   ;;  %s530_s1 = inlined_call_operand.hbm [shape: f32[8,32], index: 1, kind: input, shape index: {}]   ;;  %s531_s2 = inlined_call_operand.vmem [shape: f32[1,16,128], index: 2, kind: input, shape index: {}]   ;;  %s532_s3 = inlined_call_operand.hbm [shape: f32[1,32,128], index: 3, kind: input, shape index: {}]   ;;  %s533_s4 = inlined_call_operand.vmem [shape: f32[1,1,128], index: 4, kind: input, shape index: {}]   ;;  %s534_s5 = inlined_call_operand.hbm [shape: f32[8,32], index: 5, kind: input, shape index: {}, may-alias: {5,7}]   ;;  %s535_s6 = inlined_call_operand.hbm [shape: f32[8,32], index: 6, kind: output, shape index: {0}]   ;;  %s536_s7 = inlined_call_operand.hbm [shape: f32[8,32], index: 7, kind: output, shape index: {1}, may-alias: {5,7}]  }
   0x1   :  { %14 = vsyncpa [#allocation6], 0 }
   0x2   :  { %15 = vsyncpa [#allocation4], 0 }
   0x3   :  { %16 = vsyncpa [#allocation10], 0  ;;  %s447_s24 = smov [#allocation5]  }
   0x4   :  { %s36_s25 = sshll.u32 %s447_s24, 4  ;;  %s37_s25 = int_to_ptr.vmem [resolvable:$true] %s36_s25 }
   0x5   :  { %s347_s26 = scalar_lea.vmem %s37_s25, 512  ;;  %p352_p1 = scmp.lt.s32.totalorder %s37_s25, %s37_s25 }
   0x6   :  { %p348_p0 = scmp.ne.s32.totalorder %s37_s25, %s347_s26  ;;  %p353_p2 = scmp.lt.s32.totalorder %s347_s26, %s347_s26 }
   0x8   :  { %p354_p3 = por %p353_p2, %p352_p1 }
   0xa   :  { %p355_p4 = pnand %p354_p3, %p348_p0 }
   0xc   :  { %358 = shalt.err (!%p355_p4)
}
   0xd   :  { %s448_s27 = smov 128   ;;  %s449_s28 = smov 8  }
   0xe   :  { %42 = dma.hbm_to_vmem [thread:$0]  %s532_s3, 512, %s37_s25, [#allocation6], %s448_s27, %s448_s27, %s449_s28  }
   0xf   :  { %s450_s8 = smov [#allocation2]   ;;  %s451_s10 = smov [#allocation7]  }
  0x10   :  { %s25_s9 = sshll.u32 %s450_s8, 4  ;;  %s51_s11 = sshll.u32 %s451_s10, 4  ;;  %s26_s9 = int_to_ptr.vmem [resolvable:$true] %s25_s9  ;;  %s52_s11 = int_to_ptr.vmem [resolvable:$true] %s51_s11 }
  0x11   :  { %s367_s12 = scalar_lea.vmem %s26_s9, 128  ;;  %p372_p6 = scmp.lt.s32.totalorder %s26_s9, %s26_s9 }
  0x12   :  { %p368_p5 = scmp.ne.s32.totalorder %s26_s9, %s367_s12  ;;  %p373_p7 = scmp.lt.s32.totalorder %s367_s12, %s367_s12 }
  0x14   :  { %p374_p8 = por %p373_p7, %p372_p6 }
  0x16   :  { %p375_p9 = pnand %p374_p8, %p368_p5 }
  0x18   :  { %378 = shalt.err (!%p375_p9)
}
  0x19   :  { %28 = dma.hbm_to_vmem [thread:$0]  %s530_s1, 128, %s26_s9, [#allocation3]  }
  0x1a   :  { %s387_s15 = scalar_lea.vmem %s52_s11, 128  ;;  %p392_p11 = scmp.lt.s32.totalorder %s52_s11, %s52_s11 }
  0x1b   :  { %p388_p10 = scmp.ne.s32.totalorder %s52_s11, %s387_s15  ;;  %p393_p12 = scmp.lt.s32.totalorder %s387_s15, %s387_s15 }
  0x1d   :  { %p394_p13 = por %p393_p12, %p392_p11 }
  0x1f   :  { %p395_p0 = pnand %p394_p13, %p388_p10 }
  0x21   :  { %398 = shalt.err (!%p395_p0)
}
  0x22   :  { %54 = dma.hbm_to_vmem [thread:$0]  %s534_s5, 128, %s52_s11, [#allocation6]  }
  0x23   :  { %439 = dma.done.wait [#allocation3], 128  }
  0x24   :  { %440 = vsyncadd [#allocation3], 4294967168 }
  0x25   :  { %441 = dma.done.wait [#allocation6], 640  }
  0x26   :  { %442 = vsyncadd [#allocation6], 4294966656  ;;  %v452_v0 = vmov 0.0   ;;  %vm453_vm0 = vmmov 0   ;;  %v71_v1 = vld [vmem:[#allocation5 + $0x18] sm:$0xff]  ;;  %v70_v2 = vld [vmem:[#allocation5 + $0x10] sm:$0xff] }
  0x27   :  { %301 = vmatprep.subr.mxu0 %v452_v0  ;;  %312 = vmatprep.subr.mxu1 %v452_v0  ;;  %v66_v3 = vld [vmem:[%s531_s2 + $0x8] sm:$0xff]  ;;  %v65_v4 = vld [vmem:[%s531_s2] sm:$0xff]  ;;  %vm146_vm1 = vcmask 130048   ;;  %v69_v6 = vld [vmem:[#allocation5 + $0x8] sm:$0xff]  ;;  %vm72_vm2 = vcmask 261120   ;;  %s454_s21 = smov 96  }
  0x28   :  { %316 = vmatprep.mubr.msk.f32.mxu1 %vm453_vm0, %v452_v0  ;;  %309 = vmatprep.mubr.msk.f32.mxu0 %vm453_vm0, %v452_v0  ;;  %v64_v5 = vld [vmem:[%s529_s0] sm:$0xff]  ;;  %v68_v7 = vld [vmem:[#allocation5] sm:$0xff]  ;;  %s455_s22 = smov 64  }
  0x29   :  { %302 = vmatpush3.msra.mxu0 %v71_v1  ;;  %313 = vmatpush3.msra.mxu1 %v66_v3  ;;  %v67_v8 = vld [vmem:[#allocation2] sm:$0xff]  ;;  %v235_v22 = vld [vmem:[#allocation7] sm:$0xff] }
  0x2a   :  { %303 = vmatprep.subr.mxu0 %v452_v0  ;;  %314 = vmatprep.subr.mxu1 %v452_v0  ;;  %v291_v12 = vld [vmem:[%s533_s4] ss:$0 sm:$0xff]  ;;  %s456_s4 = smov [#allocation9]  }
  0x2b   :  { %304 = vmatpush3.msra.mxu0 %v70_v2  ;;  %315 = vmatpush3.msra.mxu1 %v65_v4  ;;  %s275_s23 = sshll.u32 %s456_s4, 4  ;;  %s276_s23 = int_to_ptr.vmem [resolvable:$true] %s275_s23 }
  0x2c   :  { %305 = vmatprep.subr.mxu0 %v452_v0  ;;  %317 = vmatmul.mubr.msk.f32.vlgmr.msra.gmra.mxu1 %vm146_vm1, %v64_v5  ;;  %s399_s24 = scalar_lea.vmem %s276_s23, 128  ;;  %p404_p2 = scmp.lt.s32.totalorder %s276_s23, %s276_s23 }
  0x2d   :  { %306 = vmatpush3.msra.mxu0 %v69_v6  ;;  %p400_p1 = scmp.ne.s32.totalorder %s276_s23, %s399_s24  ;;  %p405_p3 = scmp.lt.s32.totalorder %s399_s24, %s399_s24 }
  0x2e   :  { %307 = vmatprep.subr.mxu0 %v452_v0 }
  0x2f   :  { %308 = vmatpush3.msra.mxu0 %v68_v7  ;;  %p406_p4 = por %p405_p3, %p404_p2 }
  0x30   :  { %310 = vmatmul.mubr.msk.f32.vlgmr.msra.gmra.mxu0 %vm72_vm2, %v67_v8 }
  0x31   :  { %p407_p5 = pnand %p406_p4, %p400_p1 }
  0xec   :  { %v216_v9 = vpop.f32.mrf.mxu1 }
  0xee   :  { %v318_v10 = vpop.f32.mrf.mxu1 }
  0xf0   :  { %v142_v11 = vpop.f32.mrf.mxu0 }
  0xf1   :  { %v217_v13 = vadd.f32 %v216_v9, %v142_v11 }
  0xf2   :  { %v311_v14 = vpop.f32.mrf.mxu0 }
  0xf3   :  { %v227_v15 = vadd.f32 %v291_v12, %v217_v13 }
  0xf5   :  { %v292_v16 = vmul.f32 -1.442695, %v227_v15 }
  0xf7   :  { %331 = vpow2.f32 %v292_v16 }
 0x104   :  { %v332_v17 = vpop.eup %331 }
 0x105   :  { %v231_v18 = vadd.f32 1.0, %v332_v17 }
 0x107   :  { %333 = vrcp.f32 %v231_v18 }
 0x108   :  { %335 = vtanh.f32 %v227_v15 }
 0x114   :  { %v334_v19 = vpop.eup %333 }
 0x115   :  { %237 = vrot.lane.b32.xlu0 %v334_v19, %s454_s21  ;;  %v336_v20 = vpop.eup %335 }
 0x119   :  { %242 = vrot.lane.b32.xlu0 %v336_v20, %s455_s22 }
 0x187   :  { %v238_v21 = vpop.permute.xlu0 %237 }
 0x188   :  { %v240_v24 = vmul.f32 %v238_v21, %v235_v22 }
 0x18b   :  { %v243_v23 = vpop.permute.xlu0 %242 }
 0x18c   :  { %v245_v25 = vmul.f32 %v334_v19, %v243_v23 }
 0x18e   :  { %v246_v26 = vadd.f32 %v245_v25, %v240_v24 }
 0x190   :  { %337 = vtanh.f32 %v246_v26  ;;  %258 = vst.msk [vmem:[#allocation9] sm:$0xff] %vm72_vm2, %v246_v26 }
 0x19d   :  { %v338_v27 = vpop.eup %337 }
 0x19e   :  { %249 = vrot.lane.b32.xlu1 %v338_v27, %s454_s21 }
 0x19f   :  { %410 = shalt.err (!%p407_p5)
}
 0x1a0   :  { %278 = dma.vmem_to_hbm [thread:$0]  %s276_s23, 128, %s536_s7, [#allocation10]  }
 0x1a1   :  { %s457_s27 = smov 32   ;;  %s458_s28 = smov [#allocation8]  }
 0x1a2   :  { %s265_s29 = sshll.u32 %s458_s28, 4  ;;  %s266_s29 = int_to_ptr.vmem [resolvable:$true] %s265_s29 }
 0x1a3   :  { %s419_s30 = scalar_lea.vmem %s266_s29, 128  ;;  %p424_p7 = scmp.lt.s32.totalorder %s266_s29, %s266_s29 }
 0x1a4   :  { %p420_p6 = scmp.ne.s32.totalorder %s266_s29, %s419_s30  ;;  %p425_p8 = scmp.lt.s32.totalorder %s419_s30, %s419_s30 }
 0x1a6   :  { %p426_p9 = por %p425_p8, %p424_p7 }
 0x1a8   :  { %p427_p10 = pnand %p426_p9, %p420_p6 }
 0x210   :  { %v250_v28 = vpop.permute.xlu1 %249 }
 0x211   :  { %v252_v29 = vmul.f32 %v334_v19, %v250_v28 }
 0x213   :  { %254 = vrot.lane.b32.xlu1 %v252_v29, %s457_s27 }
 0x285   :  { %v255_v30 = vpop.permute.xlu1 %254 }
 0x286   :  { %257 = vst.msk [vmem:[#allocation8] sm:$0xff] %vm72_vm2, %v255_v30 }
 0x287   :  { %430 = shalt.err (!%p427_p10)
}
 0x288   :  { %268 = dma.vmem_to_hbm [thread:$0]  %s266_s29, 128, %s535_s6, [#allocation4]  }
 0x289   :  { %443 = dma.done.wait [#allocation4], 128  }
 0x28a   :  { %444 = vsyncadd [#allocation4], 4294967168 }
 0x28b   :  { %445 = dma.done.wait [#allocation10], 128  }
 0x28c   :  { %446 = vsyncadd [#allocation10], 4294967168 }
 0x28d   :  { %285 = vsyncpa [#allocation3], 1 }
 0x28e   :  { %286 = vsyncpa [#allocation6], 1 }
 0x28f   :  { %287 = vsyncpa [#allocation4], 1 }
 0x290   :  { %288 = vsyncpa [#allocation10], 1 }

</bundles_post_ra>
